<compile_context>
chip_gen: v5e
topology: v5e:2x2
jax: 0.10.0
libtpu: 0.0.40
codegen_flags: <defaults>
</compile_context>

<pallas_src>
import functools

import jax
import jax.numpy as jnp
from jax import lax
from jax.experimental import pallas as pl
from jax.experimental.pallas import tpu as pltpu

LANE = 128
SUBLANE = 8


def _round_up(x, m):
    return ((x + m - 1) // m) * m


# ----------------------------------------------------------------------------
# Fused kernel: all 7 graph-convolution layers + sum over nodes + final Linear.
# Everything (features, block-diag adjacency, all weights) stays in VMEM.
# ----------------------------------------------------------------------------
def _gcn_fused_kernel(x_ref, a_ref,
                      w1_ref, b1_ref, w2_ref, b2_ref, w3_ref, b3_ref,
                      wfc_ref, bfc_ref,
                      sum_ref, hid_ref):
    BN = x_ref.shape[0]          # B * N (batch folded into the matmul M dim)
    H8 = w2_ref.shape[0]         # true nhid rounded up to the sublane multiple
    B = sum_ref.shape[0]
    N = BN // B

    a = a_ref[...]               # block-diagonal adjacency, loaded ONCE (f32)

    def graph_layer(xk, w, b_row):
        # relu(nn.Linear(x)): bf16 operands, f32 MXU accumulation.
        h = jnp.dot(xk.astype(jnp.bfloat16), w,
                    preferred_element_type=jnp.float32)
        h = jnp.maximum(h + b_row, 0.0)
        # torch.bmm(A, h) for the whole batch as ONE block-diagonal matmul.
        return jnp.dot(a, h, preferred_element_type=jnp.float32)

    # gc1 (contraction over the true nfeat, padded only to a sublane multiple).
    x = graph_layer(x_ref[...], w1_ref[...], b1_ref[...])

    # gc2 applied 5 times with SHARED weights: weights loaded and bias
    # broadcast hoisted ONCE before the unrolled loop.
    w2 = w2_ref[...]
    b2 = jnp.broadcast_to(b2_ref[...], (BN, b2_ref.shape[1]))
    x = lax.fori_loop(0, 5,
                      lambda _, v: graph_layer(v[:, :H8], w2, b2),
                      x, unroll=True)

    # gc3
    x = graph_layer(x[:, :H8], w3_ref[...], b3_ref[...])

    # Head: feature_sum_hidden = sum over nodes; feature_sum = fc(hidden).
    hidden = jnp.sum(x.reshape(B, N, x.shape[1]), axis=1)        # (B, H128)
    hid_ref[...] = hidden
    sum_ref[...] = (jnp.dot(hidden[:, :H8].astype(jnp.bfloat16), wfc_ref[...],
                            preferred_element_type=jnp.float32)
                    + bfc_ref[...])


# ----------------------------------------------------------------------------
# One-time parameter preparation (NOT in the per-call path):
#   * weights -> [fan_in padded to 8, fan_out padded to 128], cast to bf16
#   * biases  -> (1, fan_out padded to 128), kept f32
# Zero-padding is numerically exact: padded weight rows/cols and bias entries
# are 0, so padded feature columns stay identically 0 through relu / A@h / sum.
# ----------------------------------------------------------------------------
def prepare_gcn_params(params):
    def prep(wb):
        W, b = wb
        kin, kout = W.shape
        kp = _round_up(kin, SUBLANE)
        op = _round_up(kout, LANE)
        Wp = jnp.pad(W, ((0, kp - kin), (0, op - kout))).astype(jnp.bfloat16)
        bp = jnp.pad(b, (0, op - kout)).astype(jnp.float32).reshape(1, op)
        return Wp, bp
    return {k: prep(v) for k, v in params.items()}


# ----------------------------------------------------------------------------
# Wrapper: block-diagonal adjacency, (B*N, F) feature layout, one pallas_call.
# ----------------------------------------------------------------------------
def gcn_fused_forward(feature, A, kparams):
    B, N, nfeat = feature.shape
    W1p, b1p = kparams["gc1"]
    W2p, b2p = kparams["gc2"]
    W3p, b3p = kparams["gc3"]
    Wfcp, bfcp = kparams["fc"]

    F8 = W1p.shape[0]
    H128 = W1p.shape[1]
    H8 = W2p.shape[0]
    C128 = Wfcp.shape[1]
    BN = B * N

    # Fold batch into the matmul M dimension; pad K only to a sublane multiple.
    x2d = feature.reshape(BN, nfeat)
    if F8 != nfeat:
        x2d = jnp.pad(x2d, ((0, 0), (0, F8 - nfeat)))

    # Block-diagonal adjacency: A_bd[b*N+i, c*N+j] = A[b,i,j] iff b == c.
    A_bd = (jnp.eye(B, dtype=A.dtype)[:, None, :, None]
            * A[:, :, None, :]).reshape(BN, BN)

    args = (x2d, A_bd, W1p, b1p, W2p, b2p, W3p, b3p, Wfcp, bfcp)

    flops = (2 * BN * F8 * H128 + 2 * BN * BN * H128          # gc1
             + 6 * (2 * BN * H8 * H128 + 2 * BN * BN * H128)  # 5x gc2 + gc3
             + 2 * B * H8 * C128)                             # head fc
    bytes_accessed = (sum(int(a.size) * a.dtype.itemsize for a in args)
                      + 4 * (B * C128 + B * H128))

    vmem = pl.BlockSpec(memory_space=pltpu.MemorySpace.VMEM)

    out_sum, out_hid = pl.pallas_call(
        _gcn_fused_kernel,
        out_shape=(jax.ShapeDtypeStruct((B, C128), jnp.float32),
                   jax.ShapeDtypeStruct((B, H128), jnp.float32)),
        in_specs=[vmem] * len(args),
        out_specs=(vmem, vmem),
        cost_estimate=pl.CostEstimate(flops=flops, transcendentals=0,
                                      bytes_accessed=bytes_accessed),
    )(*args)

    return out_sum, out_hid


# ----------------------------------------------------------------------------
# Parameter init (deterministic, mirrors nn.Linear's U(-1/sqrt(fan_in), ...)).
# Weights stored as [in_features, out_features] (transposed vs. PyTorch) so
# the kernel computes x @ W + b  ==  F.linear(x, W_pt, b).
# ----------------------------------------------------------------------------
def _init_linear(key, fan_in, fan_out):
    kw, kb = jax.random.split(key)
    bound = 1.0 / jnp.sqrt(jnp.float32(fan_in))
    W = jax.random.uniform(kw, (fan_in, fan_out), jnp.float32, -bound, bound)
    b = jax.random.uniform(kb, (fan_out,), jnp.float32, -bound, bound)
    return W, b


def init_gcn_params(key, nfeat, nhid, nclass):
    k1, k2, k3, k4 = jax.random.split(key, 4)
    return {
        "gc1": _init_linear(k1, nfeat, nhid),
        "gc2": _init_linear(k2, nhid, nhid),
        "gc3": _init_linear(k3, nhid, nhid),
        "fc": _init_linear(k4, nhid, nclass),
    }


@functools.partial(jax.jit, static_argnames=("nhid", "nclass"))
def gcn_forward(kparams, feature, A, *, nhid, nclass):
    out_sum, out_hid = gcn_fused_forward(feature, A, kparams)
    return out_sum[:, :nclass], out_hid[:, :nhid]


if __name__ == "__main__":
    B, N = 2, 16          # batch of graphs, nodes per graph
    nfeat, nhid, nclass = 8, 32, 4

    key = jax.random.PRNGKey(0)
    k_feat, k_adj, k_param = jax.random.split(key, 3)

    feature = jax.random.normal(k_feat, (B, N, nfeat), jnp.float32)
    A = jax.random.uniform(k_adj, (B, N, N), jnp.float32)

    params = init_gcn_params(k_param, nfeat, nhid, nclass)
    kparams = prepare_gcn_params(params)     # padded ONCE, outside the hot path

    feature_sum, feature_sum_hidden = gcn_forward(
        kparams, feature, A, nhid=nhid, nclass=nclass)
    jax.block_until_ready((feature_sum, feature_sum_hidden))

    assert feature_sum.shape == (B, nclass)
    assert feature_sum_hidden.shape == (B, nhid)
    assert bool(jnp.all(jnp.isfinite(feature_sum)))
    assert bool(jnp.all(jnp.isfinite(feature_sum_hidden)))
    print("KERNEL_OK")
</pallas_src>

<mosaic_0001>
module attributes {stable_mosaic.version = 11 : i64} {
  func.func @_gcn_fused_kernel(%arg0: memref<32x8xf32, #tpu.memory_space<vmem>>, %arg1: memref<32x32xf32, #tpu.memory_space<vmem>>, %arg2: memref<8x128xbf16, #tpu.memory_space<vmem>>, %arg3: memref<1x128xf32, #tpu.memory_space<vmem>>, %arg4: memref<32x128xbf16, #tpu.memory_space<vmem>>, %arg5: memref<1x128xf32, #tpu.memory_space<vmem>>, %arg6: memref<32x128xbf16, #tpu.memory_space<vmem>>, %arg7: memref<1x128xf32, #tpu.memory_space<vmem>>, %arg8: memref<32x128xbf16, #tpu.memory_space<vmem>>, %arg9: memref<1x128xf32, #tpu.memory_space<vmem>>, %arg10: memref<2x128xf32, #tpu.memory_space<vmem>>, %arg11: memref<2x128xf32, #tpu.memory_space<vmem>>) attributes {dimension_semantics = [], scalar_prefetch = 0 : i64, scratch_operands = 0 : i64, tpu.core_type = #tpu.core_type<tc>} {
    %c0 = arith.constant 0 : index
    %c0_0 = arith.constant 0 : index
    %0 = vector.load %arg1[%c0, %c0_0] : memref<32x32xf32, #tpu.memory_space<vmem>>, vector<32x32xf32>
    %c0_1 = arith.constant 0 : index
    %c0_2 = arith.constant 0 : index
    %1 = vector.load %arg0[%c0_1, %c0_2] : memref<32x8xf32, #tpu.memory_space<vmem>>, vector<32x8xf32>
    %c0_3 = arith.constant 0 : index
    %c0_4 = arith.constant 0 : index
    %2 = vector.load %arg2[%c0_3, %c0_4] : memref<8x128xbf16, #tpu.memory_space<vmem>>, vector<8x128xbf16>
    %c0_5 = arith.constant 0 : index
    %c0_6 = arith.constant 0 : index
    %3 = vector.load %arg3[%c0_5, %c0_6] : memref<1x128xf32, #tpu.memory_space<vmem>>, vector<1x128xf32>
    %4 = arith.truncf %1 : vector<32x8xf32> to vector<32x8xbf16>
    %cst = arith.constant dense<0.000000e+00> : vector<32x128xf32>
    %5 = tpu.matmul %4, %2, %cst {dimension_numbers = #tpu.dot_dimension_numbers<[1], [0], [0], [1], [0, 0, 1, 1], [], []>} : vector<32x8xbf16>, vector<8x128xbf16>, vector<32x128xf32> -> vector<32x128xf32>
    %6 = vector.broadcast %3 : vector<1x128xf32> to vector<32x128xf32>
    %7 = arith.addf %5, %6 : vector<32x128xf32>
    %cst_7 = arith.constant 0.000000e+00 : f32
    %8 = vector.broadcast %cst_7 : f32 to vector<32x128xf32>
    %9 = arith.maximumf %7, %8 : vector<32x128xf32>
    %cst_8 = arith.constant dense<0.000000e+00> : vector<32x128xf32>
    %10 = tpu.matmul %0, %9, %cst_8 {dimension_numbers = #tpu.dot_dimension_numbers<[1], [0], [0], [1], [0, 0, 1, 1], [], []>} : vector<32x32xf32>, vector<32x128xf32>, vector<32x128xf32> -> vector<32x128xf32>
    %c0_9 = arith.constant 0 : index
    %c0_10 = arith.constant 0 : index
    %11 = vector.load %arg4[%c0_9, %c0_10] : memref<32x128xbf16, #tpu.memory_space<vmem>>, vector<32x128xbf16>
    %c0_11 = arith.constant 0 : index
    %c0_12 = arith.constant 0 : index
    %12 = vector.load %arg5[%c0_11, %c0_12] : memref<1x128xf32, #tpu.memory_space<vmem>>, vector<1x128xf32>
    %13 = vector.shape_cast %12 : vector<1x128xf32> to vector<1x128xf32>
    %14 = vector.broadcast %13 : vector<1x128xf32> to vector<32x128xf32>
    %c0_i32 = arith.constant 0 : i32
    %15 = vector.extract_strided_slice %10 {offsets = [0, 0], sizes = [32, 32], strides = [1, 1]} : vector<32x128xf32> to vector<32x32xf32>
    %16 = arith.truncf %15 : vector<32x32xf32> to vector<32x32xbf16>
    %cst_13 = arith.constant dense<0.000000e+00> : vector<32x128xf32>
    %17 = tpu.matmul %16, %11, %cst_13 {dimension_numbers = #tpu.dot_dimension_numbers<[1], [0], [0], [1], [0, 0, 1, 1], [], []>} : vector<32x32xbf16>, vector<32x128xbf16>, vector<32x128xf32> -> vector<32x128xf32>
    %18 = arith.addf %17, %14 : vector<32x128xf32>
    %cst_14 = arith.constant 0.000000e+00 : f32
    %19 = vector.broadcast %cst_14 : f32 to vector<32x128xf32>
    %20 = arith.maximumf %18, %19 : vector<32x128xf32>
    %cst_15 = arith.constant dense<0.000000e+00> : vector<32x128xf32>
    %21 = tpu.matmul %0, %20, %cst_15 {dimension_numbers = #tpu.dot_dimension_numbers<[1], [0], [0], [1], [0, 0, 1, 1], [], []>} : vector<32x32xf32>, vector<32x128xf32>, vector<32x128xf32> -> vector<32x128xf32>
    %c1_i32 = arith.constant 1 : i32
    %22 = vector.extract_strided_slice %21 {offsets = [0, 0], sizes = [32, 32], strides = [1, 1]} : vector<32x128xf32> to vector<32x32xf32>
    %23 = arith.truncf %22 : vector<32x32xf32> to vector<32x32xbf16>
    %cst_16 = arith.constant dense<0.000000e+00> : vector<32x128xf32>
    %24 = tpu.matmul %23, %11, %cst_16 {dimension_numbers = #tpu.dot_dimension_numbers<[1], [0], [0], [1], [0, 0, 1, 1], [], []>} : vector<32x32xbf16>, vector<32x128xbf16>, vector<32x128xf32> -> vector<32x128xf32>
    %25 = arith.addf %24, %14 : vector<32x128xf32>
    %cst_17 = arith.constant 0.000000e+00 : f32
    %26 = vector.broadcast %cst_17 : f32 to vector<32x128xf32>
    %27 = arith.maximumf %25, %26 : vector<32x128xf32>
    %cst_18 = arith.constant dense<0.000000e+00> : vector<32x128xf32>
    %28 = tpu.matmul %0, %27, %cst_18 {dimension_numbers = #tpu.dot_dimension_numbers<[1], [0], [0], [1], [0, 0, 1, 1], [], []>} : vector<32x32xf32>, vector<32x128xf32>, vector<32x128xf32> -> vector<32x128xf32>
    %c2_i32 = arith.constant 2 : i32
    %29 = vector.extract_strided_slice %28 {offsets = [0, 0], sizes = [32, 32], strides = [1, 1]} : vector<32x128xf32> to vector<32x32xf32>
    %30 = arith.truncf %29 : vector<32x32xf32> to vector<32x32xbf16>
    %cst_19 = arith.constant dense<0.000000e+00> : vector<32x128xf32>
    %31 = tpu.matmul %30, %11, %cst_19 {dimension_numbers = #tpu.dot_dimension_numbers<[1], [0], [0], [1], [0, 0, 1, 1], [], []>} : vector<32x32xbf16>, vector<32x128xbf16>, vector<32x128xf32> -> vector<32x128xf32>
    %32 = arith.addf %31, %14 : vector<32x128xf32>
    %cst_20 = arith.constant 0.000000e+00 : f32
    %33 = vector.broadcast %cst_20 : f32 to vector<32x128xf32>
    %34 = arith.maximumf %32, %33 : vector<32x128xf32>
    %cst_21 = arith.constant dense<0.000000e+00> : vector<32x128xf32>
    %35 = tpu.matmul %0, %34, %cst_21 {dimension_numbers = #tpu.dot_dimension_numbers<[1], [0], [0], [1], [0, 0, 1, 1], [], []>} : vector<32x32xf32>, vector<32x128xf32>, vector<32x128xf32> -> vector<32x128xf32>
    %c3_i32 = arith.constant 3 : i32
    %36 = vector.extract_strided_slice %35 {offsets = [0, 0], sizes = [32, 32], strides = [1, 1]} : vector<32x128xf32> to vector<32x32xf32>
    %37 = arith.truncf %36 : vector<32x32xf32> to vector<32x32xbf16>
    %cst_22 = arith.constant dense<0.000000e+00> : vector<32x128xf32>
    %38 = tpu.matmul %37, %11, %cst_22 {dimension_numbers = #tpu.dot_dimension_numbers<[1], [0], [0], [1], [0, 0, 1, 1], [], []>} : vector<32x32xbf16>, vector<32x128xbf16>, vector<32x128xf32> -> vector<32x128xf32>
    %39 = arith.addf %38, %14 : vector<32x128xf32>
    %cst_23 = arith.constant 0.000000e+00 : f32
    %40 = vector.broadcast %cst_23 : f32 to vector<32x128xf32>
    %41 = arith.maximumf %39, %40 : vector<32x128xf32>
    %cst_24 = arith.constant dense<0.000000e+00> : vector<32x128xf32>
    %42 = tpu.matmul %0, %41, %cst_24 {dimension_numbers = #tpu.dot_dimension_numbers<[1], [0], [0], [1], [0, 0, 1, 1], [], []>} : vector<32x32xf32>, vector<32x128xf32>, vector<32x128xf32> -> vector<32x128xf32>
    %c4_i32 = arith.constant 4 : i32
    %43 = vector.extract_strided_slice %42 {offsets = [0, 0], sizes = [32, 32], strides = [1, 1]} : vector<32x128xf32> to vector<32x32xf32>
    %44 = arith.truncf %43 : vector<32x32xf32> to vector<32x32xbf16>
    %cst_25 = arith.constant dense<0.000000e+00> : vector<32x128xf32>
    %45 = tpu.matmul %44, %11, %cst_25 {dimension_numbers = #tpu.dot_dimension_numbers<[1], [0], [0], [1], [0, 0, 1, 1], [], []>} : vector<32x32xbf16>, vector<32x128xbf16>, vector<32x128xf32> -> vector<32x128xf32>
    %46 = arith.addf %45, %14 : vector<32x128xf32>
    %cst_26 = arith.constant 0.000000e+00 : f32
    %47 = vector.broadcast %cst_26 : f32 to vector<32x128xf32>
    %48 = arith.maximumf %46, %47 : vector<32x128xf32>
    %cst_27 = arith.constant dense<0.000000e+00> : vector<32x128xf32>
    %49 = tpu.matmul %0, %48, %cst_27 {dimension_numbers = #tpu.dot_dimension_numbers<[1], [0], [0], [1], [0, 0, 1, 1], [], []>} : vector<32x32xf32>, vector<32x128xf32>, vector<32x128xf32> -> vector<32x128xf32>
    %50 = vector.extract_strided_slice %49 {offsets = [0, 0], sizes = [32, 32], strides = [1, 1]} : vector<32x128xf32> to vector<32x32xf32>
    %c0_28 = arith.constant 0 : index
    %c0_29 = arith.constant 0 : index
    %51 = vector.load %arg6[%c0_28, %c0_29] : memref<32x128xbf16, #tpu.memory_space<vmem>>, vector<32x128xbf16>
    %c0_30 = arith.constant 0 : index
    %c0_31 = arith.constant 0 : index
    %52 = vector.load %arg7[%c0_30, %c0_31] : memref<1x128xf32, #tpu.memory_space<vmem>>, vector<1x128xf32>
    %53 = arith.truncf %50 : vector<32x32xf32> to vector<32x32xbf16>
    %cst_32 = arith.constant dense<0.000000e+00> : vector<32x128xf32>
    %54 = tpu.matmul %53, %51, %cst_32 {dimension_numbers = #tpu.dot_dimension_numbers<[1], [0], [0], [1], [0, 0, 1, 1], [], []>} : vector<32x32xbf16>, vector<32x128xbf16>, vector<32x128xf32> -> vector<32x128xf32>
    %55 = vector.broadcast %52 : vector<1x128xf32> to vector<32x128xf32>
    %56 = arith.addf %54, %55 : vector<32x128xf32>
    %cst_33 = arith.constant 0.000000e+00 : f32
    %57 = vector.broadcast %cst_33 : f32 to vector<32x128xf32>
    %58 = arith.maximumf %56, %57 : vector<32x128xf32>
    %cst_34 = arith.constant dense<0.000000e+00> : vector<32x128xf32>
    %59 = tpu.matmul %0, %58, %cst_34 {dimension_numbers = #tpu.dot_dimension_numbers<[1], [0], [0], [1], [0, 0, 1, 1], [], []>} : vector<32x32xf32>, vector<32x128xf32>, vector<32x128xf32> -> vector<32x128xf32>
    %60 = vector.shape_cast %59 : vector<32x128xf32> to vector<2x16x128xf32>
    %cst_35 = arith.constant dense<0.000000e+00> : vector<2x128xf32>
    %61 = vector.multi_reduction <add>, %60, %cst_35 [1] : vector<2x16x128xf32> to vector<2x128xf32>
    %c0_36 = arith.constant 0 : index
    %c0_37 = arith.constant 0 : index
    %62 = vector.load %arg11[%c0_36, %c0_37] : memref<2x128xf32, #tpu.memory_space<vmem>>, vector<2x128xf32>
    tpu.vector_store %arg11[%c0_36, %c0_37], %61 {strides = array<i32>} : memref<2x128xf32, #tpu.memory_space<vmem>>, vector<2x128xf32>,
    %63 = vector.extract_strided_slice %61 {offsets = [0, 0], sizes = [2, 32], strides = [1, 1]} : vector<2x128xf32> to vector<2x32xf32>
    %64 = arith.truncf %63 : vector<2x32xf32> to vector<2x32xbf16>
    %c0_38 = arith.constant 0 : index
    %c0_39 = arith.constant 0 : index
    %65 = vector.load %arg8[%c0_38, %c0_39] : memref<32x128xbf16, #tpu.memory_space<vmem>>, vector<32x128xbf16>
    %cst_40 = arith.constant dense<0.000000e+00> : vector<2x128xf32>
    %66 = tpu.matmul %64, %65, %cst_40 {dimension_numbers = #tpu.dot_dimension_numbers<[1], [0], [0], [1], [0, 0, 1, 1], [], []>} : vector<2x32xbf16>, vector<32x128xbf16>, vector<2x128xf32> -> vector<2x128xf32>
    %c0_41 = arith.constant 0 : index
    %c0_42 = arith.constant 0 : index
    %67 = vector.load %arg9[%c0_41, %c0_42] : memref<1x128xf32, #tpu.memory_space<vmem>>, vector<1x128xf32>
    %68 = vector.broadcast %67 : vector<1x128xf32> to vector<2x128xf32>
    %69 = arith.addf %66, %68 : vector<2x128xf32>
    %c0_43 = arith.constant 0 : index
    %c0_44 = arith.constant 0 : index
    %70 = vector.load %arg10[%c0_43, %c0_44] : memref<2x128xf32, #tpu.memory_space<vmem>>, vector<2x128xf32>
    tpu.vector_store %arg10[%c0_43, %c0_44], %69 {strides = array<i32>} : memref<2x128xf32, #tpu.memory_space<vmem>>, vector<2x128xf32>,
    return
  }
}

</mosaic_0001>

<bundles_post_ra>
// kernel: gcn_forward.1
= control target key start
LH: loop header
LB: loop body
LE: loop exit
PB: predicated region body
PF: predicated region fallthrough
CT: control target
= control target key end

     0   :  { %17 = vsyncpa [#allocation3], 0  ;;  %vm62_vm0 = vcmask 1043456   ;;  %vm55_vm1 = vcmask 64512   ;;  %s988_s0 = inlined_call_operand.vmem [shape: f32[32,8], index: 0, kind: input, shape index: {}]   ;;  %s989_s1 = inlined_call_operand.vmem [shape: f32[32,32], index: 1, kind: input, shape index: {}]   ;;  %s990_s2 = inlined_call_operand.vmem [shape: bf16[8,128], index: 2, kind: input, shape index: {}]   ;;  %s991_s3 = inlined_call_operand.vmem [shape: f32[1,128], index: 3, kind: input, shape index: {}]   ;;  %s992_s4 = inlined_call_operand.vmem [shape: bf16[32,128], index: 4, kind: input, shape index: {}]   ;;  %s993_s5 = inlined_call_operand.vmem [shape: f32[1,128], index: 5, kind: input, shape index: {}]   ;;  %s994_s6 = inlined_call_operand.vmem [shape: bf16[32,128], index: 6, kind: input, shape index: {}]   ;;  %s995_s7 = inlined_call_operand.vmem [shape: f32[1,128], index: 7, kind: input, shape index: {}]   ;;  %s996_s8 = inlined_call_operand.vmem [shape: bf16[32,128], index: 8, kind: input, shape index: {}]   ;;  %s997_s9 = inlined_call_operand.vmem [shape: f32[1,128], index: 9, kind: input, shape index: {}]   ;;  %s998_s10 = inlined_call_operand.hbm [shape: f32[2,128], index: 10, kind: output, shape index: {0}]   ;;  %s999_s11 = inlined_call_operand.hbm [shape: f32[2,128], index: 11, kind: output, shape index: {1}]  }
   0x1   :  { %v48_v0 = vld [vmem:[%s990_s2] sm:$0xf]  ;;  %v45_v2 = vld [vmem:[%s988_s0 + $0x8] sm:$0xff]  ;;  %v46_v5 = vld [vmem:[%s988_s0 + $0x10] sm:$0xff] }
   0x2   :  { %v44_v1 = vld [vmem:[%s988_s0] sm:$0xff]  ;;  %v64_v3 = vsel %vm62_vm0, %v48_v0, 0  ;;  %v47_v6 = vld [vmem:[%s988_s0 + $0x18] sm:$0xff] }
   0x3   :  { %v50_v4 = vpack.c.bf16 %v45_v2, %v44_v1  ;;  %73 = vmatpush.bf16.msra.mxu0 %v64_v3  ;;  %701 = vmatpush.bf16.msra.mxu1 %v64_v3  ;;  %v51_v7 = vpack.c.bf16 %v47_v6, %v46_v5 }
   0x4   :  { %18 = vsyncpa [#allocation5], 0  ;;  %v696_v10 = vld [vmem:[%s992_s4 + $0x8] sm:$0xff]  ;;  %v708_v11 = vld [vmem:[%s991_s3] ss:$0 sm:$0xff]  ;;  %vm89_vm2 = vcmask 261120  }
   0x5   :  { %165 = vmatpush.bf16.msra.mxu2 %v696_v10  ;;  %v850_v22 = vld [vmem:[%s989_s1 + $0x8] sm:$0xff]  ;;  %v855_v23 = vld [vmem:[%s989_s1] sm:$0xff]  ;;  %v864_v24 = vld [vmem:[%s989_s1 + $0x10] sm:$0xff]  ;;  %vm547_vm3 = vcmask 1041409   ;;  %s614_s28 = sshll.u32 %s999_s11, 4  ;;  %s765_s3 = smov [#allocation2]   ;;  %s615_s28 = int_to_ptr.hbm [resolvable:$true] %s614_s28 }
   0x6   :  { %628 = vmatmul.msk.bf16.vlgmr.msra.gmra.mxu0 %vm55_vm1, %v50_v4  ;;  %629 = vmatmul.msk.bf16.vlgmr.msra.gmra.mxu1 %vm55_vm1, %v51_v7  ;;  %v871_v25 = vld [vmem:[%s989_s1 + $0x18] sm:$0xff]  ;;  %v695_v26 = vld [vmem:[%s992_s4] sm:$0xff]  ;;  %s601_s30 = sshll.u32 %s765_s3, 4  ;;  %s603_s14 = sshll.u32 %s998_s10, 4  ;;  %s602_s30 = int_to_ptr.vmem [resolvable:$true] %s601_s30  ;;  %s604_s14 = int_to_ptr.hbm [resolvable:$true] %s603_s14 }
   0x7   :  { %225 = vmatpush.bf16.msrb.mxu0 %v696_v10  ;;  %v883_v36 = vld [vmem:[%s993_s5] ss:$0 sm:$0xff] }
   0x9   :  { %166 = vmatpush.bf16.msra.mxu2 %v695_v26 }
   0xb   :  { %226 = vmatpush.bf16.msrb.mxu0 %v695_v26 }
   0xd   :  { %285 = vmatpush.bf16.msrb.mxu2 %v696_v10 }
   0xf   :  { %345 = vmatpush.bf16.msra.mxu0 %v696_v10 }
  0x11   :  { %286 = vmatpush.bf16.msrb.mxu2 %v695_v26 }
  0x13   :  { %346 = vmatpush.bf16.msra.mxu0 %v695_v26 }
  0x83   :  { %v75_v8 = vpop.f32.mrf.mxu0  ;;  %v80_v9 = vpop.f32.mrf.mxu1 }
  0x84   :  { %v81_v14 = vadd.f32 %v708_v11, %v80_v9  ;;  %v76_v18 = vadd.f32 %v708_v11, %v75_v8 }
  0x86   :  { %v87_v19 = vmax.f32 %v81_v14, 0.0  ;;  %v85_v21 = vmax.f32 %v76_v18, 0.0 }
  0x8b   :  { %v77_v12 = vpop.f32.mrf.mxu0  ;;  %v82_v13 = vpop.f32.mrf.mxu1 }
  0x8c   :  { %v83_v15 = vadd.f32 %v708_v11, %v82_v13  ;;  %v78_v16 = vadd.f32 %v708_v11, %v77_v12 }
  0x8e   :  { %v88_v17 = vmax.f32 %v83_v15, 0.0  ;;  %v86_v20 = vmax.f32 %v78_v16, 0.0 }
  0x90   :  { %114 = vmatpush.msrb.mxu1 %v88_v17  ;;  %702 = vmatpush.msra.mxu3 %v88_v17 }
  0x92   :  { %115 = vmatpush.msrb.mxu1 %v87_v19  ;;  %703 = vmatpush.msra.mxu3 %v87_v19 }
  0x94   :  { %116 = vmatpush.msrb.mxu1 %v86_v20  ;;  %704 = vmatpush.msra.mxu3 %v86_v20 }
  0x96   :  { %117 = vmatpush.msrb.mxu1 %v85_v21  ;;  %705 = vmatpush.msra.mxu3 %v85_v21 }
  0x97   :  { %631 = vmatmul.msk.f32.vlgmr.msra.gmra.mxu3 %vm89_vm2, %v850_v22  ;;  %630 = vmatmul.msk.f32.vlgmr.msrb.gmra.mxu1 %vm89_vm2, %v855_v23 }
  0x9f   :  { %632 = vmatmul.msk.f32.gmra.mxu3 %vm89_vm2, %v864_v24 }
  0xa7   :  { %633 = vmatmul.msk.f32.gmra.mxu3 %vm89_vm2, %v871_v25 }
 0x114   :  { %v119_v27 = vpop.f32.mrf.mxu1 }
 0x11a   :  { %v122_v28 = vpop.f32.mrf.mxu3 }
 0x11b   :  { %v139_v29 = vpack.c.bf16 %v122_v28, %v119_v27 }
 0x11d   :  { %642 = vmatmul.msk.bf16.vlgmr.msra.gmra.mxu2 %vm89_vm2, %v139_v29 }
 0x11e   :  { %405 = vmatpush.bf16.msra.mxu2 %v696_v10 }
 0x122   :  { %v125_v30 = vpop.f32.mrf.mxu3  ;;  %406 = vmatpush.bf16.msra.mxu2 %v695_v26 }
 0x12a   :  { %v128_v31 = vpop.f32.mrf.mxu3 }
 0x12b   :  { %v140_v32 = vpack.c.bf16 %v128_v31, %v125_v30 }
 0x12d   :  { %643 = vmatmul.msk.bf16.gmra.mxu2 %vm89_vm2, %v140_v32 }
 0x1a0   :  { %v168_v33 = vpop.f32.mrf.mxu2 }
 0x1a1   :  { %v169_v42 = vadd.f32 %v883_v36, %v168_v33 }
 0x1a3   :  { %v178_v45 = vmax.f32 %v169_v42, 0.0 }
 0x1a8   :  { %v170_v34 = vpop.f32.mrf.mxu2 }
 0x1a9   :  { %v171_v40 = vadd.f32 %v883_v36, %v170_v34 }
 0x1ab   :  { %v179_v44 = vmax.f32 %v171_v40, 0.0 }
 0x1b0   :  { %v173_v35 = vpop.f32.mrf.mxu2 }
 0x1b1   :  { %v174_v38 = vadd.f32 %v883_v36, %v173_v35 }
 0x1b3   :  { %v180_v43 = vmax.f32 %v174_v38, 0.0 }
 0x1b8   :  { %v175_v37 = vpop.f32.mrf.mxu2 }
 0x1b9   :  { %v176_v39 = vadd.f32 %v883_v36, %v175_v37 }
 0x1bb   :  { %v181_v41 = vmax.f32 %v176_v39, 0.0 }
 0x1bd   :  { %194 = vmatpush.msrb.mxu3 %v181_v41 }
 0x1bf   :  { %195 = vmatpush.msrb.mxu3 %v180_v43 }
 0x1c1   :  { %196 = vmatpush.msrb.mxu3 %v179_v44 }
 0x1c3   :  { %197 = vmatpush.msrb.mxu3 %v178_v45 }
 0x1c4   :  { %644 = vmatmul.msk.f32.vlgmr.msrb.gmra.mxu3 %vm89_vm2, %v855_v23 }
 0x1cc   :  { %645 = vmatmul.msk.f32.gmra.mxu3 %vm89_vm2, %v850_v22 }
 0x1d4   :  { %646 = vmatmul.msk.f32.gmra.mxu3 %vm89_vm2, %v864_v24 }
 0x1dc   :  { %647 = vmatmul.msk.f32.gmra.mxu3 %vm89_vm2, %v871_v25 }
 0x247   :  { %v199_v46 = vpop.f32.mrf.mxu3 }
 0x24f   :  { %v202_v47 = vpop.f32.mrf.mxu3 }
 0x250   :  { %v211_v48 = vpack.c.bf16 %v202_v47, %v199_v46 }
 0x252   :  { %648 = vmatmul.msk.bf16.vlgmr.msrb.gmra.mxu0 %vm89_vm2, %v211_v48 }
 0x257   :  { %v205_v49 = vpop.f32.mrf.mxu3 }
 0x25f   :  { %v208_v50 = vpop.f32.mrf.mxu3 }
 0x260   :  { %v212_v51 = vpack.c.bf16 %v208_v50, %v205_v49 }
 0x262   :  { %649 = vmatmul.msk.bf16.gmra.mxu0 %vm89_vm2, %v212_v51 }
 0x2cf   :  { %v228_v52 = vpop.f32.mrf.mxu0 }
 0x2d0   :  { %v229_v60 = vadd.f32 %v883_v36, %v228_v52 }
 0x2d2   :  { %v238_v63 = vmax.f32 %v229_v60, 0.0 }
 0x2d7   :  { %v230_v53 = vpop.f32.mrf.mxu0 }
 0x2d8   :  { %v231_v58 = vadd.f32 %v883_v36, %v230_v53 }
 0x2da   :  { %v239_v62 = vmax.f32 %v231_v58, 0.0 }
 0x2df   :  { %v233_v54 = vpop.f32.mrf.mxu0 }
 0x2e0   :  { %v234_v56 = vadd.f32 %v883_v36, %v233_v54 }
 0x2e2   :  { %v240_v61 = vmax.f32 %v234_v56, 0.0 }
 0x2e7   :  { %v235_v55 = vpop.f32.mrf.mxu0 }
 0x2e8   :  { %v236_v57 = vadd.f32 %v883_v36, %v235_v55 }
 0x2ea   :  { %v241_v59 = vmax.f32 %v236_v57, 0.0 }
 0x2ec   :  { %254 = vmatpush.msra.mxu1 %v241_v59  ;;  %v697_v59 = vld [vmem:[%s994_s6] sm:$0xff] }
 0x2ee   :  { %255 = vmatpush.msra.mxu1 %v240_v61 }
 0x2f0   :  { %256 = vmatpush.msra.mxu1 %v239_v62 }
 0x2f2   :  { %257 = vmatpush.msra.mxu1 %v238_v63 }
 0x2f3   :  { %650 = vmatmul.msk.f32.vlgmr.msra.gmra.mxu1 %vm89_vm2, %v855_v23 }
 0x2fb   :  { %651 = vmatmul.msk.f32.gmra.mxu1 %vm89_vm2, %v850_v22 }
 0x303   :  { %652 = vmatmul.msk.f32.gmra.mxu1 %vm89_vm2, %v864_v24 }
 0x30b   :  { %653 = vmatmul.msk.f32.gmra.mxu1 %vm89_vm2, %v871_v25 }
 0x370   :  { %v259_v0 = vpop.f32.mrf.mxu1 }
 0x378   :  { %v262_v1 = vpop.f32.mrf.mxu1 }
 0x379   :  { %v271_v2 = vpack.c.bf16 %v262_v1, %v259_v0 }
 0x37b   :  { %654 = vmatmul.msk.bf16.vlgmr.msrb.gmra.mxu2 %vm89_vm2, %v271_v2 }
 0x380   :  { %v265_v3 = vpop.f32.mrf.mxu1 }
 0x388   :  { %v268_v4 = vpop.f32.mrf.mxu1 }
 0x389   :  { %v272_v5 = vpack.c.bf16 %v268_v4, %v265_v3 }
 0x38b   :  { %655 = vmatmul.msk.bf16.gmra.mxu2 %vm89_vm2, %v272_v5  ;;  %v710_v5 = vld [vmem:[%s995_s7] ss:$0 sm:$0xff] }
 0x3fe   :  { %v288_v6 = vpop.f32.mrf.mxu2 }
 0x3ff   :  { %v289_v14 = vadd.f32 %v883_v36, %v288_v6 }
 0x401   :  { %v298_v17 = vmax.f32 %v289_v14, 0.0 }
 0x406   :  { %v290_v7 = vpop.f32.mrf.mxu2 }
 0x407   :  { %v291_v12 = vadd.f32 %v883_v36, %v290_v7 }
 0x409   :  { %v299_v16 = vmax.f32 %v291_v12, 0.0 }
 0x40e   :  { %v293_v8 = vpop.f32.mrf.mxu2 }
 0x40f   :  { %v294_v10 = vadd.f32 %v883_v36, %v293_v8 }
 0x411   :  { %v300_v15 = vmax.f32 %v294_v10, 0.0 }
 0x416   :  { %v295_v9 = vpop.f32.mrf.mxu2 }
 0x417   :  { %v296_v11 = vadd.f32 %v883_v36, %v295_v9 }
 0x419   :  { %v301_v13 = vmax.f32 %v296_v11, 0.0 }
 0x41b   :  { %314 = vmatpush.msra.mxu3 %v301_v13 }
 0x41d   :  { %315 = vmatpush.msra.mxu3 %v300_v15 }
 0x41f   :  { %316 = vmatpush.msra.mxu3 %v299_v16  ;;  %v700_v16 = vld [vmem:[%s996_s8 + $0x8] sm:$0xff] }
 0x420   :  { %588 = vmatpush.bf16.msrb.mxu2 %v700_v16 }
 0x421   :  { %317 = vmatpush.msra.mxu3 %v298_v17 }
 0x422   :  { %656 = vmatmul.msk.f32.vlgmr.msra.gmra.mxu3 %vm89_vm2, %v855_v23 }
 0x42a   :  { %657 = vmatmul.msk.f32.gmra.mxu3 %vm89_vm2, %v850_v22 }
 0x432   :  { %658 = vmatmul.msk.f32.gmra.mxu3 %vm89_vm2, %v864_v24 }
 0x43a   :  { %659 = vmatmul.msk.f32.gmra.mxu3 %vm89_vm2, %v871_v25 }
 0x4a5   :  { %v319_v18 = vpop.f32.mrf.mxu3 }
 0x4ad   :  { %v322_v19 = vpop.f32.mrf.mxu3 }
 0x4ae   :  { %v331_v20 = vpack.c.bf16 %v322_v19, %v319_v18 }
 0x4b0   :  { %660 = vmatmul.msk.bf16.vlgmr.msra.gmra.mxu0 %vm89_vm2, %v331_v20 }
 0x4b5   :  { %v325_v21 = vpop.f32.mrf.mxu3 }
 0x4bd   :  { %v328_v26 = vpop.f32.mrf.mxu3 }
 0x4be   :  { %v332_v27 = vpack.c.bf16 %v328_v26, %v325_v21 }
 0x4c0   :  { %661 = vmatmul.msk.bf16.gmra.mxu0 %vm89_vm2, %v332_v27 }
 0x52d   :  { %v348_v28 = vpop.f32.mrf.mxu0 }
 0x52e   :  { %v349_v37 = vadd.f32 %v883_v36, %v348_v28 }
 0x530   :  { %v358_v40 = vmax.f32 %v349_v37, 0.0 }
 0x535   :  { %v350_v29 = vpop.f32.mrf.mxu0 }
 0x536   :  { %v351_v34 = vadd.f32 %v883_v36, %v350_v29 }
 0x538   :  { %v359_v39 = vmax.f32 %v351_v34, 0.0 }
 0x53d   :  { %v353_v30 = vpop.f32.mrf.mxu0 }
 0x53e   :  { %v354_v32 = vadd.f32 %v883_v36, %v353_v30 }
 0x540   :  { %v360_v38 = vmax.f32 %v354_v32, 0.0 }
 0x545   :  { %v355_v31 = vpop.f32.mrf.mxu0 }
 0x546   :  { %v356_v33 = vadd.f32 %v883_v36, %v355_v31 }
 0x548   :  { %v361_v35 = vmax.f32 %v356_v33, 0.0 }
 0x54a   :  { %374 = vmatpush.msrb.mxu1 %v361_v35 }
 0x54c   :  { %375 = vmatpush.msrb.mxu1 %v360_v38 }
 0x54e   :  { %376 = vmatpush.msrb.mxu1 %v359_v39 }
 0x550   :  { %377 = vmatpush.msrb.mxu1 %v358_v40 }
 0x551   :  { %662 = vmatmul.msk.f32.vlgmr.msrb.gmra.mxu1 %vm89_vm2, %v855_v23 }
 0x559   :  { %663 = vmatmul.msk.f32.gmra.mxu1 %vm89_vm2, %v850_v22 }
 0x561   :  { %664 = vmatmul.msk.f32.gmra.mxu1 %vm89_vm2, %v864_v24 }
 0x569   :  { %665 = vmatmul.msk.f32.gmra.mxu1 %vm89_vm2, %v871_v25 }
 0x5ce   :  { %v379_v41 = vpop.f32.mrf.mxu1 }
 0x5d6   :  { %v382_v42 = vpop.f32.mrf.mxu1 }
 0x5d7   :  { %v391_v43 = vpack.c.bf16 %v382_v42, %v379_v41 }
 0x5d9   :  { %666 = vmatmul.msk.bf16.vlgmr.msra.gmra.mxu2 %vm89_vm2, %v391_v43  ;;  %v711_v43 = vld [vmem:[%s997_s9] ss:$0 sm:$0xff] }
 0x5de   :  { %v385_v44 = vpop.f32.mrf.mxu1 }
 0x5e6   :  { %v388_v45 = vpop.f32.mrf.mxu1 }
 0x5e7   :  { %v392_v46 = vpack.c.bf16 %v388_v45, %v385_v44 }
 0x5e9   :  { %667 = vmatmul.msk.bf16.gmra.mxu2 %vm89_vm2, %v392_v46 }
 0x65c   :  { %v408_v47 = vpop.f32.mrf.mxu2 }
 0x65d   :  { %v409_v55 = vadd.f32 %v883_v36, %v408_v47 }
 0x65f   :  { %v418_v58 = vmax.f32 %v409_v55, 0.0 }
 0x664   :  { %v410_v48 = vpop.f32.mrf.mxu2 }
 0x665   :  { %v411_v53 = vadd.f32 %v883_v36, %v410_v48 }
 0x667   :  { %v419_v57 = vmax.f32 %v411_v53, 0.0 }
 0x66c   :  { %v413_v49 = vpop.f32.mrf.mxu2 }
 0x66d   :  { %v414_v51 = vadd.f32 %v883_v36, %v413_v49 }
 0x66f   :  { %v420_v56 = vmax.f32 %v414_v51, 0.0 }
 0x674   :  { %v415_v50 = vpop.f32.mrf.mxu2 }
 0x675   :  { %v416_v52 = vadd.f32 %v883_v36, %v415_v50  ;;  %v698_v36 = vld [vmem:[%s994_s6 + $0x8] sm:$0xff] }
 0x676   :  { %485 = vmatpush.bf16.msrb.mxu0 %v698_v36 }
 0x677   :  { %v421_v54 = vmax.f32 %v416_v52, 0.0 }
 0x679   :  { %434 = vmatpush.msrb.mxu3 %v421_v54 }
 0x67a   :  { %486 = vmatpush.bf16.msrb.mxu0 %v697_v59 }
 0x67b   :  { %435 = vmatpush.msrb.mxu3 %v420_v56 }
 0x67d   :  { %436 = vmatpush.msrb.mxu3 %v419_v57 }
 0x67f   :  { %437 = vmatpush.msrb.mxu3 %v418_v58 }
 0x680   :  { %668 = vmatmul.msk.f32.vlgmr.msrb.gmra.mxu3 %vm89_vm2, %v855_v23 }
 0x688   :  { %669 = vmatmul.msk.f32.gmra.mxu3 %vm89_vm2, %v850_v22 }
 0x690   :  { %670 = vmatmul.msk.f32.gmra.mxu3 %vm89_vm2, %v864_v24 }
 0x698   :  { %671 = vmatmul.msk.f32.gmra.mxu3 %vm89_vm2, %v871_v25 }
 0x703   :  { %v439_v60 = vpop.f32.mrf.mxu3 }
 0x70b   :  { %v442_v61 = vpop.f32.mrf.mxu3 }
 0x70c   :  { %v456_v62 = vpack.c.bf16 %v442_v61, %v439_v60 }
 0x70e   :  { %680 = vmatmul.msk.bf16.vlgmr.msrb.gmra.mxu0 %vm89_vm2, %v456_v62 }
 0x713   :  { %v445_v63 = vpop.f32.mrf.mxu3 }
 0x71b   :  { %v448_v0 = vpop.f32.mrf.mxu3 }
 0x71c   :  { %v457_v1 = vpack.c.bf16 %v448_v0, %v445_v63 }
 0x71e   :  { %681 = vmatmul.msk.bf16.gmra.mxu0 %vm89_vm2, %v457_v1 }
 0x78b   :  { %v488_v2 = vpop.f32.mrf.mxu0 }
 0x78c   :  { %v489_v11 = vadd.f32 %v710_v5, %v488_v2 }
 0x78e   :  { %v498_v14 = vmax.f32 %v489_v11, 0.0 }
 0x793   :  { %v490_v3 = vpop.f32.mrf.mxu0 }
 0x794   :  { %v491_v9 = vadd.f32 %v710_v5, %v490_v3 }
 0x796   :  { %v499_v13 = vmax.f32 %v491_v9, 0.0 }
 0x79b   :  { %v493_v4 = vpop.f32.mrf.mxu0 }
 0x79c   :  { %v494_v7 = vadd.f32 %v710_v5, %v493_v4 }
 0x79e   :  { %v500_v12 = vmax.f32 %v494_v7, 0.0 }
 0x7a3   :  { %v495_v6 = vpop.f32.mrf.mxu0 }
 0x7a4   :  { %v496_v8 = vadd.f32 %v710_v5, %v495_v6 }
 0x7a6   :  { %v501_v10 = vmax.f32 %v496_v8, 0.0 }
 0x7a8   :  { %514 = vmatpush.msra.mxu1 %v501_v10 }
 0x7aa   :  { %515 = vmatpush.msra.mxu1 %v500_v12 }
 0x7ac   :  { %516 = vmatpush.msra.mxu1 %v499_v13 }
 0x7ae   :  { %517 = vmatpush.msra.mxu1 %v498_v14 }
 0x7af   :  { %682 = vmatmul.msk.f32.vlgmr.msra.gmra.mxu1 %vm89_vm2, %v855_v23  ;;  %v699_v23 = vld [vmem:[%s996_s8] sm:$0xff]  ;;  %s764_s8 = smov [#allocation4]  }
 0x7b0   :  { %589 = vmatpush.bf16.msrb.mxu2 %v699_v23  ;;  %s612_s26 = sshll.u32 %s764_s8, 4  ;;  %s613_s26 = int_to_ptr.vmem [resolvable:$true] %s612_s26 }
 0x7b7   :  { %683 = vmatmul.msk.f32.gmra.mxu1 %vm89_vm2, %v850_v22 }
 0x7bf   :  { %684 = vmatmul.msk.f32.gmra.mxu1 %vm89_vm2, %v864_v24 }
 0x7c7   :  { %685 = vmatmul.msk.f32.gmra.mxu1 %vm89_vm2, %v871_v25 }
 0x82c   :  { %v519_v15 = vpop.f32.mrf.mxu1 }
 0x834   :  { %v522_v17 = vpop.f32.mrf.mxu1 }
 0x835   :  { %v531_v18 = vadd.f32 %v522_v17, %v519_v15 }
 0x837   :  { %v532_v22 = vrot.slane %v531_v18, 4 }
 0x839   :  { %v533_v20 = vadd.f32 %v532_v22, %v531_v18 }
 0x83b   :  { %v534_v24 = vrot.slane %v533_v20, 2 }
 0x83c   :  { %v525_v19 = vpop.f32.mrf.mxu1 }
 0x83d   :  { %v535_v26 = vadd.f32 %v534_v24, %v533_v20 }
 0x83f   :  { %v536_v28 = vrot.slane %v535_v26, 1 }
 0x841   :  { %v537_v31 = vadd.f32 %v536_v28, %v535_v26 }
 0x843   :  { %v551_v34 = vpack.c.bf16 %v537_v31, %v537_v31 }
 0x844   :  { %v528_v21 = vpop.f32.mrf.mxu1 }
 0x845   :  { %v538_v25 = vadd.f32 %v528_v21, %v525_v19  ;;  %v563_v39 = vunpack.c.l.b16 %v551_v34 }
 0x847   :  { %v539_v27 = vrot.slane %v538_v25, 4 }
 0x849   :  { %v540_v29 = vadd.f32 %v539_v27, %v538_v25 }
 0x84b   :  { %v541_v30 = vrot.slane %v540_v29, 2 }
 0x84d   :  { %v542_v32 = vadd.f32 %v541_v30, %v540_v29 }
 0x84f   :  { %v543_v33 = vrot.slane %v542_v32, 1 }
 0x851   :  { %v544_v35 = vadd.f32 %v543_v33, %v542_v32 }
 0x853   :  { %v552_v37 = vpack.c.bf16 %v544_v35, %v544_v35  ;;  %v548_v38 = vsel %vm547_vm3, %v544_v35, %v537_v31 }
 0x854   :  { %550 = vst [vmem:[#allocation4] sm:$0x3] %v548_v38 }
 0x855   :  { %v564_v40 = vunpack.c.l.b16 %v552_v37  ;;  %617 = dma.vmem_to_hbm [thread:$0]  %s613_s26, 32, %s615_s28, [#allocation5]  }
 0x857   :  { %v565_v41 = vsel %vm547_vm3, %v564_v40, %v563_v39 }
 0x858   :  { %v566_v42 = vpack.c.b16 %v565_v41, %v565_v41 }
 0x85a   :  { %694 = vmatmul.msk.bf16.vlgmr.msrb.gmra.mxu2 %vm89_vm2, %v566_v42 }
 0x8dd   :  { %v591_v44 = vpop.f32.mrf.mxu2 }
 0x8de   :  { %v592_v45 = vadd.f32 %v711_v43, %v591_v44 }
 0x8e0   :  { %595 = vst [vmem:[#allocation2] sm:$0x3] %v592_v45 }
 0x8e1   :  { %606 = dma.vmem_to_hbm [thread:$0]  %s602_s30, 32, %s604_s14, [#allocation3]  }
 0x8e5   :  { %v593_v46 = vpop.f32.mrf.mxu2 }
 0x8e6   :  { %760 = dma.done.wait [#allocation3], 32  }
 0x8e7   :  { %761 = vsyncadd [#allocation3], 4294967264 }
 0x8e8   :  { %762 = dma.done.wait [#allocation5], 32  }
 0x8e9   :  { %763 = vsyncadd [#allocation5], 4294967264 }
 0x8ea   :  { %626 = vsyncpa [#allocation3], 1 }
 0x8eb   :  { %627 = vsyncpa [#allocation5], 1 }

</bundles_post_ra>
